<compile_context>
chip_gen: v5e
topology: v5e:2x2
jax: 0.10.0
libtpu: 0.0.40
codegen_flags: <defaults>
</compile_context>

<pallas_src>
import functools

import jax
import jax.numpy as jnp
import numpy as np
from jax.experimental import pallas as pl
from jax.experimental.pallas import tpu as pltpu


# ----------------------------------------------------------------------------
# Pallas kernel: channels-major 1x1-conv tile  o = w @ x + b
# ----------------------------------------------------------------------------
def _proj_kernel(w_ref, x_ref, b_ref, o_ref):
    """w: (Cout, Cin) resident, x: (Cin, TM) tile, b: (Cout, 1), o: (Cout, TM).

    Spatial positions (TM) sit on the 128-lane axis -> lane-dense loads/stores.
    MXU is massively under-used at Cin=4/Cout=16, but the op is HBM-bound so
    that is free.
    """
    x = x_ref[...].astype(w_ref.dtype)                       # no weight narrowing
    acc = jnp.dot(w_ref[...], x, preferred_element_type=jnp.float32)
    o_ref[...] = (acc + b_ref[...]).astype(o_ref.dtype)


def _pick_tile(hw, block_m):
    """Largest multiple of 128 that divides hw and is <= block_m (if possible)."""
    if hw % 128 != 0:
        # TODO(synk): a very large, non-128-divisible H*W would want a masked
        # ragged-tail path instead of one full-width block.
        return hw
    q = hw // 128
    t = max(1, min(block_m, hw) // 128)
    while q % t:
        t -= 1
    return 128 * t


# ----------------------------------------------------------------------------
# Forward pass
# ----------------------------------------------------------------------------
@functools.partial(jax.jit, static_argnames=("factor", "block_m"))
def upsample_forward(x_nchw, w_oihw, bias, *, factor=2, block_m=16384):
    n, c, h, w = x_nchw.shape
    cout = w_oihw.shape[0]
    assert cout == c * factor * factor, (cout, c, factor)
    hw = h * w

    # Free views only -- no HBM passes before the kernel.
    x3 = x_nchw.reshape(n, c, hw)                           # (N, Cin, H*W)
    wdt = jnp.promote_types(x_nchw.dtype, w_oihw.dtype)
    w2 = w_oihw.reshape(cout, c).astype(wdt)                # 1x1 kernel -> (Cout, Cin)
    b2 = bias.reshape(cout, 1).astype(jnp.float32)

    tm = _pick_tile(hw, block_m)
    grid = (n, hw // tm)

    flops = 2 * cout * c * n * hw
    bytes_accessed = (x3.size * x3.dtype.itemsize
                      + n * cout * hw * x3.dtype.itemsize
                      + w2.size * w2.dtype.itemsize
                      + b2.size * 4)

    y = pl.pallas_call(
        _proj_kernel,
        out_shape=jax.ShapeDtypeStruct((n, cout, hw), x_nchw.dtype),
        grid=grid,
        in_specs=[
            pl.BlockSpec((cout, c), lambda ni, mi: (0, 0)),           # weights: resident
            pl.BlockSpec((None, c, tm), lambda ni, mi: (ni, 0, mi)),  # x: (Cin, TM) tile
            pl.BlockSpec((cout, 1), lambda ni, mi: (0, 0)),           # bias: resident
        ],
        out_specs=pl.BlockSpec((None, cout, tm), lambda ni, mi: (ni, 0, mi)),
        compiler_params=pltpu.CompilerParams(
            dimension_semantics=("parallel", "parallel")),   # shard over both TCs on v7x
        cost_estimate=pl.CostEstimate(
            flops=flops, transcendentals=0, bytes_accessed=bytes_accessed),
    )(w2, x3, b2)

    # TODO(synk): fusing PixelShuffle's width interleave into the kernel store
    # needs an in-kernel lane perfect-shuffle (non-uniform lane permute); it is
    # kept as one XLA transpose here for lowering robustness.
    r = factor
    y = y.reshape(n, c, r, r, h, w)                          # (N, C, r, r, H, W)
    out = jnp.transpose(y, (0, 1, 4, 2, 5, 3)).reshape(n, c, h * r, w * r)
    return out


# ----------------------------------------------------------------------------
# Pure-JAX reference (for correctness check)
# ----------------------------------------------------------------------------
def _ref_forward(x_nchw, w_oihw, bias, factor):
    y = jax.lax.conv_general_dilated(
        x_nchw, w_oihw, window_strides=(1, 1), padding="VALID",
        dimension_numbers=("NCHW", "OIHW", "NCHW"),
        precision=jax.lax.Precision.HIGHEST)
    y = y + bias[None, :, None, None]
    n, cq, h, w = y.shape
    c = cq // (factor * factor)
    y = y.reshape(n, c, factor, factor, h, w)               # (N, C, r, r, H, W)
    y = jnp.transpose(y, (0, 1, 4, 2, 5, 3))                # (N, C, H, r, W, r)
    return y.reshape(n, c, h * factor, w * factor)


if __name__ == "__main__":
    key = jax.random.PRNGKey(0)
    kx, kw, kb = jax.random.split(key, 3)

    n_chan, factor = 4, 2
    cout = n_chan * factor * factor

    # Small NCHW input consistent with the module.
    x = jax.random.normal(kx, (2, n_chan, 16, 16), jnp.float32)
    # xavier_normal_(gain=1.0)-style init for the 1x1 projection + a bias.
    std = (2.0 / (n_chan + cout)) ** 0.5
    w = std * jax.random.normal(kw, (cout, n_chan, 1, 1), jnp.float32)
    b = 0.1 * jax.random.normal(kb, (cout,), jnp.float32)

    ref = jax.block_until_ready(_ref_forward(x, w, b, factor))

    # Default (large-tile) config: at this tiny size the grid collapses to (2, 1).
    out = jax.block_until_ready(upsample_forward(x, w, b, factor=factor))
    assert out.shape == (2, n_chan, 32, 32), out.shape
    np.testing.assert_allclose(np.asarray(out), np.asarray(ref),
                               rtol=1e-2, atol=1e-3)

    # Multi-tile config (grid=(2, 2)) to exercise the pipelined multi-step path.
    out2 = jax.block_until_ready(
        upsample_forward(x, w, b, factor=factor, block_m=128))
    np.testing.assert_allclose(np.asarray(out2), np.asarray(ref),
                               rtol=1e-2, atol=1e-3)

    print("KERNEL_OK")
</pallas_src>

<mosaic_0001>
module attributes {stable_mosaic.version = 11 : i64} {
  func.func @_proj_kernel(%arg0: i32, %arg1: i32, %arg2: memref<16x4xf32, #tpu.memory_space<vmem>>, %arg3: memref<1x4x256xf32, #tpu.memory_space<vmem>>, %arg4: memref<16x1xf32, #tpu.memory_space<vmem>>, %arg5: memref<1x16x256xf32, #tpu.memory_space<vmem>>) attributes {dimension_semantics = [#tpu.dimension_semantics<parallel>, #tpu.dimension_semantics<parallel>], iteration_bounds = array<i64: 2, 1>, scalar_prefetch = 0 : i64, scratch_operands = 0 : i64, tpu.core_type = #tpu.core_type<tc>, window_params = [{pipeline_mode = #tpu.pipeline_mode<synchronous>, transform_indices = @transform_0, window_bounds = array<i64: 16, 4>}, {transform_indices = @transform_1, window_bounds = array<i64: 1, 4, 256>}, {pipeline_mode = #tpu.pipeline_mode<synchronous>, transform_indices = @transform_2, window_bounds = array<i64: 16, 1>}, {transform_indices = @transform_3, window_bounds = array<i64: 1, 16, 256>}]} {
    %c0 = arith.constant 0 : index
    %c0_0 = arith.constant 0 : index
    %c0_1 = arith.constant 0 : index
    %0 = vector.load %arg3[%c0, %c0_0, %c0_1] : memref<1x4x256xf32, #tpu.memory_space<vmem>>, vector<1x4x256xf32>
    %1 = vector.shape_cast %0 : vector<1x4x256xf32> to vector<4x256xf32>
    %c0_2 = arith.constant 0 : index
    %c0_3 = arith.constant 0 : index
    %2 = vector.load %arg2[%c0_2, %c0_3] : memref<16x4xf32, #tpu.memory_space<vmem>>, vector<16x4xf32>
    %cst = arith.constant dense<0.000000e+00> : vector<16x256xf32>
    %3 = tpu.matmul %2, %1, %cst {dimension_numbers = #tpu.dot_dimension_numbers<[1], [0], [0], [1], [0, 0, 1, 1], [], []>} : vector<16x4xf32>, vector<4x256xf32>, vector<16x256xf32> -> vector<16x256xf32>
    %c0_4 = arith.constant 0 : index
    %c0_5 = arith.constant 0 : index
    %4 = vector.load %arg4[%c0_4, %c0_5] : memref<16x1xf32, #tpu.memory_space<vmem>>, vector<16x1xf32>
    %5 = vector.broadcast %4 : vector<16x1xf32> to vector<16x256xf32>
    %6 = arith.addf %3, %5 : vector<16x256xf32>
    %c0_6 = arith.constant 0 : index
    %c0_7 = arith.constant 0 : index
    %c0_8 = arith.constant 0 : index
    %7 = vector.load %arg5[%c0_6, %c0_7, %c0_8] : memref<1x16x256xf32, #tpu.memory_space<vmem>>, vector<1x16x256xf32>
    %8 = vector.shape_cast %7 : vector<1x16x256xf32> to vector<16x256xf32>
    %9 = vector.shape_cast %6 : vector<16x256xf32> to vector<1x16x256xf32>
    tpu.vector_store %arg5[%c0_6, %c0_7, %c0_8], %9 {strides = array<i32>} : memref<1x16x256xf32, #tpu.memory_space<vmem>>, vector<1x16x256xf32>,
    return
  }
  func.func @transform_0(%arg0: i32, %arg1: i32) -> (i32, i32) {
    %c0_i32 = arith.constant 0 : i32
    %c0_i32_0 = arith.constant 0 : i32
    %c0_i32_1 = arith.constant 0 : i32
    return %c0_i32, %c0_i32_0 : i32, i32
  }
  func.func @transform_1(%arg0: i32, %arg1: i32) -> (i32, i32, i32) {
    %c0_i32 = arith.constant 0 : i32
    %c0_i32_0 = arith.constant 0 : i32
    return %arg0, %c0_i32, %arg1 : i32, i32, i32
  }
  func.func @transform_2(%arg0: i32, %arg1: i32) -> (i32, i32) {
    %c0_i32 = arith.constant 0 : i32
    %c0_i32_0 = arith.constant 0 : i32
    %c0_i32_1 = arith.constant 0 : i32
    return %c0_i32, %c0_i32_0 : i32, i32
  }
  func.func @transform_3(%arg0: i32, %arg1: i32) -> (i32, i32, i32) {
    %c0_i32 = arith.constant 0 : i32
    %c0_i32_0 = arith.constant 0 : i32
    return %arg0, %c0_i32, %arg1 : i32, i32, i32
  }
}

</mosaic_0001>

<bundles_post_ra>
// kernel: upsample_forward.1
= control target key start
LH: loop header
LB: loop body
LE: loop exit
PB: predicated region body
PF: predicated region fallthrough
CT: control target
= control target key end

     0   :  { %s470_s12 = smov 0   ;;  %s472_s13 = smov 0   ;;  %s515_s0 = inlined_call_operand.vmem [shape: f32[16,4], index: 0, kind: input, shape index: {}]   ;;  %s516_s1 = inlined_call_operand.vmem [shape: f32[2,4,256], index: 1, kind: input, shape index: {}]   ;;  %s517_s2 = inlined_call_operand.vmem [shape: f32[16,1], index: 2, kind: input, shape index: {}]   ;;  %s518_s3 = inlined_call_operand.vmem [shape: f32[2,16,256], index: 3, kind: output, shape index: {}]  }
   0x1   :  { %s474_s14 = smov 0  }
   0x2 LB: > { %s25_s15 = sadd.s32 1, %s443_s13  ;;  %p382_p0 = scmp.ge.s32.totalorder %s447_s14, 1  ;;  %s447_s14 = sphi %s474_s14, %s13_s14   ;;  %s443_s13 = sphi %s472_s13, %s520_s13   ;;  %s439_s12 = sphi %s470_s12, %s519_s12  }
   0x3   : > { %p27_p1 = scmp.ge.s32.totalorder %s25_s15, 2  ;;  %p158_p2 = scmp.lt.s32.totalorder %s447_s14, 3 }
   0x5   : > { %s522_s15 = smov (%p27_p1, %s25_s15), 0  ;;  %p159_p3 = pnand %p382_p0, %p158_p2 }
   0x6   : > { %p191_p4 = scmp.lt.s32.totalorder (!%p159_p3), %s439_s12, 1 }
   0x7   : > { %162 = sbr.rel (%p159_p3) target bundleno = 162 (0xa2), region = 32 }
   0xc   : > { %v449_v0 = vmov 0   ;;  %v213_v1 = vld [vmem:[%s517_s2] sm:$0xff]  ;;  %s524_s12 = smov (!%p191_p4, %s439_s12), 1  ;;  %v214_v3 = vld [vmem:[%s517_s2 + $0x8] sm:$0xff]  ;;  %vm236_vm0 = vcmask 1043456   ;;  %vm229_vm1 = vcmask 31744  }
   0xd   : > { %424 = vset.pattern.permute.xlu0 %v449_v0  ;;  %s395_s18 = sshll.u32 %s524_s12, 3  ;;  %v211_v4 = vld [vmem:[%s515_s0] sm:$0xff]  ;;  %v212_v5 = vld [vmem:[%s515_s0 + $0x8] sm:$0xff]  ;;  %s396_s28 = sshll.u32 %s524_s12, 5 }
   0xe   : > { %217 = vperm.xlu0 %424, %v213_v1   ;;  %s198_s21 = scalar_lea.vmem %s516_s1, %s395_s18  ;;  %s208_s4 = scalar_lea.vmem %s518_s3, %s396_s28 }
   0xf   : > { %v210_v2 = vld [vmem:[%s198_s21] sm:$0xff] }
  0x10   : > { %226 = vst [vmem:[#allocation1] ss:$2 sm:$0xff] %v210_v2 }
  0x16   : > { %222 = vperm.xlu0 %424, %v214_v3  }
  0x17   : > { %v227_v6 = vld.sshfl [vmem:[#allocation1] sm:$0xff pattern:$0x75316420]  ;;  %v228_v7 = vld.sshfl [vmem:[#allocation1 + $0x8] sm:$0xff pattern:$0x75316420] }
  0x18   : > { %387 = vmatpush.msk.msra.mxu0 %vm236_vm0, %v227_v6  ;;  %397 = vmatpush.msk.msra.mxu2 %vm236_vm0, %v227_v6 }
  0x19   : > { %390 = vmatpush.msk.msra.mxu1 %vm236_vm0, %v228_v7  ;;  %398 = vmatpush.msk.msra.mxu3 %vm236_vm0, %v228_v7 }
  0x1a   : > { %388 = vmatmul.msk.f32.vlgmr.msra.gmra.mxu0 %vm229_vm1, %v211_v4  ;;  %389 = vmatmul.msk.f32.vlgmr.msra.gmra.mxu2 %vm229_vm1, %v212_v5 }
  0x1b   : > { %391 = vmatmul.msk.f32.vlgmr.msra.gmra.mxu1 %vm229_vm1, %v211_v4  ;;  %392 = vmatmul.msk.f32.vlgmr.msra.gmra.mxu3 %vm229_vm1, %v212_v5 }
  0x80   : > { %v218_v8 = vpop.permute.xlu0 %217 }
  0x88   : > { %v223_v13 = vpop.permute.xlu0 %222 }
  0x97   : > { %v258_v9 = vpop.f32.mrf.mxu0 }
  0x98   : > { %v259_v10 = vadd.f32 %v258_v9, %v218_v8  ;;  %v281_v11 = vpop.f32.mrf.mxu1 }
  0x99   : > { %v282_v12 = vadd.f32 %v281_v11, %v218_v8 }
  0x9a   : > { %287 = vst [vmem:[%s208_s4] sm:$0xff] %v259_v10 }
  0x9b   : > { %288 = vst [vmem:[%s208_s4 + $0x8] sm:$0xff] %v282_v12 }
  0x9d   : > { %v261_v14 = vpop.f32.mrf.mxu2 }
  0x9e   : > { %v262_v15 = vadd.f32 %v261_v14, %v223_v13  ;;  %v284_v16 = vpop.f32.mrf.mxu3 }
  0x9f   : > { %v285_v17 = vadd.f32 %v284_v16, %v223_v13 }
  0xa0   : > { %289 = vst [vmem:[%s208_s4 + $0x10] sm:$0xff] %v262_v15 }
  0xa1   : > { %290 = vst [vmem:[%s208_s4 + $0x18] sm:$0xff] %v285_v17 }
  0xa2 PF: > { %s13_s14 = sadd.s32 1, %s447_s14   ;;  %s519_s12 = smov %s443_s13 }
  0xa3   : > { %p10_p5 = scmp.ge.s32.totalorder %s13_s14, 4   ;;  %s520_s13 = smov %s522_s15 }
  0xa5   :  { %12 = sbr.rel (!%p10_p5) target bundleno = 2 (0x2), region = 62 }

</bundles_post_ra>
